<compile_context>
chip_gen: v6e
topology: v6e:2x2x1
jax: 0.10.0
libtpu: 0.0.40
codegen_flags: <defaults>
</compile_context>

<pallas_src>
import jax
import jax.numpy as jnp
from jax.experimental import pallas as pl
from jax.experimental.pallas import tpu as pltpu


def _pick_tiling_params():
    """Per-generation block / scoped-VMEM sizing.

    v5e/v6e (128 MiB VMEM): 8 MiB blocks, 48 MiB scoped-VMEM limit.
    v7x (64 MiB VMEM per TC) or unknown: 4 MiB blocks, 32 MiB limit.
    """
    try:
        vmem_cap = int(pltpu.get_tpu_info().vmem_capacity_bytes)
    except Exception:
        vmem_cap = 64 * 1024 * 1024  # conservative (v7x per-TC)
    if vmem_cap >= 128 * 1024 * 1024:
        return 8 << 20, 48 * 1024 * 1024
    return 4 << 20, 32 * 1024 * 1024


_TARGET_BLOCK_BYTES, _VMEM_LIMIT_BYTES = _pick_tiling_params()
_MIN_SPLIT_BYTES = 1 << 20  # split into >=2 grid steps above this size


def _copy_kernel(x_ref, o_ref):
    # Pure pass-through of the current VMEM tile; the op is HBM/DMA-bound so
    # nothing else belongs in the body.
    o_ref[...] = x_ref[...]


def _as_lane_dense_2d(x):
    """Reshape to a 2D slab using only free/cheap reshapes (never jnp.pad)."""
    total = x.size
    if x.ndim >= 2 and x.shape[-1] % 128 == 0:
        # Merging leading dims keeps the (8,128)-tiled layout: free bitcast.
        return x.reshape(-1, x.shape[-1])
    if total % 128 == 0:
        # Cheap re-split at a 128-lane boundary (small inputs / 1-D inputs).
        return x.reshape(total // 128, 128)
    # Ragged total: single-row slab; bounded in-kernel (full-extent block or a
    # cdiv column grid), no padding and no trailing slice anywhere.
    return x.reshape(1, total)


def _round_up(a, b):
    return -(-a // b) * b


def _block_dims(rows, cols, itemsize):
    """Pick a VMEM-safe (block_rows, block_cols, grid_r, grid_c)."""
    # Sub-32-bit dtypes pack along sublanes (f32 -> 8, bf16 -> 16, int8 -> 32).
    # TODO(synk): sub-byte dtypes (int4/fp4) would need a different packing rule.
    packing = max(1, 4 // max(1, itemsize))
    sublane = 8 * packing
    target_elems = max(128, _TARGET_BLOCK_BYTES // itemsize)

    # ---- columns -----------------------------------------------------------
    if cols % 128 == 0:
        # Lane-dense columns; cap so at least one sublane group of rows fits.
        max_cols = max(128, (target_elems // sublane) // 128 * 128)
        block_cols = min(cols, max_cols)
    else:
        # Only hit for the (1, total) ragged slab: full extent if it fits in a
        # block, otherwise 128-lane chunks with a cdiv grid bounding the tail.
        max_cols = max(128, (target_elems // 128) * 128)
        block_cols = cols if cols <= max_cols else max_cols

    # ---- rows --------------------------------------------------------------
    budget_rows = max(1, _TARGET_BLOCK_BYTES // (block_cols * itemsize))
    if budget_rows >= rows:
        block_rows = rows  # full extent: always legal
    else:
        block_rows = max(sublane, budget_rows // sublane * sublane)

    grid_r = pl.cdiv(rows, block_rows)
    grid_c = pl.cdiv(cols, block_cols)

    # ---- ensure >=2 "parallel" grid steps on medium/large inputs (v7x) ------
    if (grid_r * grid_c == 1 and rows > 2 * sublane
            and rows * cols * itemsize >= _MIN_SPLIT_BYTES):
        block_rows = min(rows, _round_up(-(-rows // 2), sublane))
        grid_r = pl.cdiv(rows, block_rows)

    return block_rows, block_cols, grid_r, grid_c


@jax.jit
def _template_copy_impl(x: jax.Array) -> jax.Array:
    if x.size == 0:
        return x
    orig_shape = x.shape
    itemsize = x.dtype.itemsize

    x2d = _as_lane_dense_2d(x)
    rows, cols = x2d.shape
    block_rows, block_cols, grid_r, grid_c = _block_dims(rows, cols, itemsize)

    out2d = pl.pallas_call(
        _copy_kernel,
        out_shape=jax.ShapeDtypeStruct((rows, cols), x.dtype),
        grid_spec=pltpu.PrefetchScalarGridSpec(
            num_scalar_prefetch=0,
            grid=(grid_r, grid_c),
            in_specs=[pl.BlockSpec((block_rows, block_cols), lambda i, j: (i, j))],
            out_specs=pl.BlockSpec((block_rows, block_cols), lambda i, j: (i, j)),
        ),
        compiler_params=pltpu.CompilerParams(
            # Both grid axes are independent: lets v7x shard grid steps across
            # its two TensorCores (bandwidth-limited scaling, but free to ask).
            dimension_semantics=("parallel", "parallel"),
            vmem_limit_bytes=_VMEM_LIMIT_BYTES,
        ),
        # Purely memory-bound: one read + one write of the slab.
        cost_estimate=pl.CostEstimate(
            flops=0, transcendentals=0,
            bytes_accessed=2 * rows * cols * itemsize),
        # No input_output_aliases: the slab is normally a free view of the
        # caller's buffer; aliasing would force a defensive pre-copy.  (If the
        # call site donates x, {0: 0} would save the output allocation.)
    )(x2d)

    return out2d.reshape(orig_shape)


def template_forward(x: jax.Array) -> jax.Array:
    """Pallas equivalent of template.forward.

    The reference forward() performs no computation, so the identity result is
    returned directly -- the kernel is elided entirely (no HBM bytes moved).
    """
    return x


def template_copy(x: jax.Array) -> jax.Array:
    """Materialized identity copy of `x` via the Pallas TPU copy kernel."""
    return _template_copy_impl(x)


if __name__ == "__main__":
    key = jax.random.PRNGKey(0)

    # forward(): reference is `pass` -> identity; kernel elided (fastest path).
    x = jax.random.normal(key, (2, 4, 16, 16), dtype=jnp.float32)
    y = template_forward(x)
    jax.block_until_ready(y)
    assert y.shape == x.shape and jnp.allclose(y, x)

    # Materialized-copy kernel: small input (total % 128 == 0 -> (16,128) slab).
    y_copy = template_copy(x)
    jax.block_until_ready(y_copy)
    assert y_copy.shape == x.shape and jnp.allclose(y_copy, x)

    # Ragged input: no pad, no trailing slice -> single full-extent block.
    x_odd = jax.random.normal(key, (3, 5, 7, 11), dtype=jnp.float32)
    y_odd = template_copy(x_odd)
    jax.block_until_ready(y_odd)
    assert y_odd.shape == x_odd.shape and jnp.allclose(y_odd, x_odd)

    # Lane-dense fast path (last dim % 128 == 0): free reshape, >=2-step grid.
    x_big = jax.random.normal(key, (4, 16, 128, 128), dtype=jnp.float32)
    y_big = template_copy(x_big)
    jax.block_until_ready(y_big)
    assert y_big.shape == x_big.shape and jnp.allclose(y_big, x_big)

    # Non-dividing row count: exercises the cdiv partial-last-block path.
    x_part = jax.random.normal(key, (7, 4, 125, 128), dtype=jnp.float32)
    y_part = template_copy(x_part)
    jax.block_until_ready(y_part)
    assert y_part.shape == x_part.shape and jnp.allclose(y_part, x_part)

    print("KERNEL_OK")
</pallas_src>

<mosaic_0001>
module attributes {stable_mosaic.version = 11 : i64} {
  func.func @_copy_kernel(%arg0: i32, %arg1: i32, %arg2: memref<16x128xf32, #tpu.memory_space<vmem>>, %arg3: memref<16x128xf32, #tpu.memory_space<vmem>>) attributes {dimension_semantics = [#tpu.dimension_semantics<parallel>, #tpu.dimension_semantics<parallel>], iteration_bounds = array<i64: 1, 1>, scalar_prefetch = 0 : i64, scratch_operands = 0 : i64, tpu.core_type = #tpu.core_type<tc>, window_params = [{transform_indices = @transform_0, window_bounds = array<i64: 16, 128>}, {transform_indices = @transform_1, window_bounds = array<i64: 16, 128>}]} {
    %c0 = arith.constant 0 : index
    %c0_0 = arith.constant 0 : index
    %0 = vector.load %arg2[%c0, %c0_0] : memref<16x128xf32, #tpu.memory_space<vmem>>, vector<16x128xf32>
    %c0_1 = arith.constant 0 : index
    %c0_2 = arith.constant 0 : index
    %1 = vector.load %arg3[%c0_1, %c0_2] : memref<16x128xf32, #tpu.memory_space<vmem>>, vector<16x128xf32>
    tpu.vector_store %arg3[%c0_1, %c0_2], %0 {strides = array<i32>} : memref<16x128xf32, #tpu.memory_space<vmem>>, vector<16x128xf32>,
    return
  }
  func.func @transform_0(%arg0: i32, %arg1: i32) -> (i32, i32) {
    %c0_i32 = arith.constant 0 : i32
    return %arg0, %arg1 : i32, i32
  }
  func.func @transform_1(%arg0: i32, %arg1: i32) -> (i32, i32) {
    %c0_i32 = arith.constant 0 : i32
    return %arg0, %arg1 : i32, i32
  }
}

</mosaic_0001>

<bundles_post_ra>
// kernel: _template_copy_impl.1
= control target key start
LH: loop header
LB: loop body
LE: loop exit
PB: predicated region body
PF: predicated region fallthrough
CT: control target
= control target key end

     0   :  { %s38_s0 = inlined_call_operand.vmem [shape: f32[16,128], index: 0, kind: input, shape index: {}]   ;;  %s39_s1 = inlined_call_operand.vmem [shape: f32[16,128], index: 1, kind: output, shape index: {}]  }
   0x1   :  { %v8_v0 = vld [vmem:[%s38_s0] sm:$0xff]  ;;  %v9_v1 = vld [vmem:[%s38_s0 + $0x8] sm:$0xff] }
   0x2   :  { %10 = vst [vmem:[%s39_s1] sm:$0xff] %v8_v0  ;;  %11 = vst [vmem:[%s39_s1 + $0x8] sm:$0xff] %v9_v1 }

</bundles_post_ra>
